<compile_context>
chip_gen: v7x
topology: tpu7x:2x2x1
jax: 0.10.0
libtpu: 0.0.40
codegen_flags: <defaults>
</compile_context>

<pallas_src>
import jax
import jax.numpy as jnp
from jax.experimental import pallas as pl
from jax.experimental.pallas import tpu as pltpu


def _logreg_kernel(x_ref, w_ref, b_ref, o_ref):
    # x_ref: (TB, D) VMEM   w_ref: (1, D) VMEM (resident)
    # b_ref: (1,)   SMEM    o_ref: (1, TB) VMEM (lane-dense, batch on lanes)
    x = x_ref[...]                                    # (TB, D) f32
    w = w_ref[...]                                    # (1, D)  f32
    # VPU multiply + XLU lane-reduce instead of an N=1 MXU matvec.
    logits = jnp.sum(x * w, axis=-1, keepdims=True)   # (TB, 1) f32
    logits = logits + b_ref[0]                        # SMEM scalar bias
    probs = jax.nn.sigmoid(logits)                    # EUP
    # Flip per-row scalars onto the lane axis so the store is a full-width,
    # unmasked vst (tiny relayout of TB values; the kernel is mem-bound).
    o_ref[...] = probs.reshape(1, -1)                 # (1, TB)


def logistic_regression(x, w, b, *, max_block_b=1024):
    """x: (B, D) f32; w: (D, 1) f32 (nn.Linear weight, transposed); b: any 1-elem f32.

    Returns sigmoid(x @ w + b) with shape (B, 1).
    """
    B, D = x.shape
    x = x.astype(jnp.float32)
    w_row = jnp.reshape(w, (1, D)).astype(jnp.float32)   # lane-dense weight
    b_vec = jnp.reshape(b, (1,)).astype(jnp.float32)     # scalar bias -> SMEM

    # ---- batch tile selection -------------------------------------------
    #  * multiple of 128 -> (1, TB) output block is lane-dense and satisfies
    #    the (8, 128) BlockSpec constraint,
    #  * 2 double-buffered x tiles (2*TB*D*4 B) capped at ~8 MiB so the
    #    pipeline fits the default scoped VMEM on every generation
    #    (v5e 16 MiB scope, v6e/v7x 32 MiB scope, v7x 64 MiB physical),
    #  * no larger than the (128-rounded) batch itself.
    vmem_budget_bytes = 8 * 1024 * 1024
    rows_by_vmem = max(128, (vmem_budget_bytes // (2 * D * 4)) // 128 * 128)
    tb = min(max_block_b, rows_by_vmem, 128 * pl.cdiv(B, 128))
    b_pad = tb * pl.cdiv(B, tb)
    if b_pad != B:
        # Pad in the wrapper instead of masking rows in the kernel.
        x = jnp.pad(x, ((0, b_pad - B), (0, 0)))

    out_row = pl.pallas_call(
        _logreg_kernel,
        out_shape=jax.ShapeDtypeStruct((1, b_pad), jnp.float32),
        grid_spec=pltpu.PrefetchScalarGridSpec(
            num_scalar_prefetch=0,
            grid=(b_pad // tb,),
            in_specs=[
                pl.BlockSpec((tb, D), lambda i: (i, 0)),            # x tile
                pl.BlockSpec((1, D), lambda i: (0, 0)),             # w resident
                pl.BlockSpec(memory_space=pltpu.MemorySpace.SMEM),  # bias scalar
            ],
            out_specs=pl.BlockSpec((1, tb), lambda i: (0, i)),
        ),
        compiler_params=pltpu.CompilerParams(
            # Independent batch tiles: lets v7x shard across its 2 TCs;
            # near-neutral on single-TC v5e/v6e.
            dimension_semantics=("parallel",)),
    )(x, w_row, b_vec)

    return out_row.reshape(b_pad, 1)[:B]


if __name__ == "__main__":
    key = jax.random.PRNGKey(0)
    kx, kw, kb = jax.random.split(key, 3)

    batch, input_dim = 8, 32
    x = jax.random.normal(kx, (batch, input_dim), dtype=jnp.float32)

    # Deterministic param init mimicking nn.Linear(input_dim, 1):
    # U(-1/sqrt(input_dim), 1/sqrt(input_dim)) for weight and bias.
    bound = 1.0 / (input_dim ** 0.5)
    w = jax.random.uniform(kw, (input_dim, 1), dtype=jnp.float32,
                           minval=-bound, maxval=bound)
    b = jax.random.uniform(kb, (1, 1), dtype=jnp.float32,
                           minval=-bound, maxval=bound)

    out = logistic_regression(x, w, b)
    jax.block_until_ready(out)

    # Pure-JAX reference check
    ref = jax.nn.sigmoid(x @ w + b)
    assert out.shape == (batch, 1)
    assert jnp.allclose(out, ref, atol=1e-5, rtol=1e-5)

    print("KERNEL_OK")
</pallas_src>

<mosaic_0001>
module attributes {stable_mosaic.version = 11 : i64} {
  func.func @_logreg_kernel(%arg0: i32, %arg1: memref<128x32xf32, #tpu.memory_space<vmem>>, %arg2: memref<1x32xf32, #tpu.memory_space<vmem>>, %arg3: memref<1xf32, #tpu.memory_space<smem>>, %arg4: memref<1x128xf32, #tpu.memory_space<vmem>>) attributes {dimension_semantics = [#tpu.dimension_semantics<parallel>], iteration_bounds = array<i64: 1>, scalar_prefetch = 0 : i64, scratch_operands = 0 : i64, tpu.core_type = #tpu.core_type<tc>, window_params = [{transform_indices = @transform_0, window_bounds = array<i64: 128, 32>}, {pipeline_mode = #tpu.pipeline_mode<synchronous>, transform_indices = @transform_1, window_bounds = array<i64: 1, 32>}, {transform_indices = @transform_2, window_bounds = array<i64: 1>}, {transform_indices = @transform_3, window_bounds = array<i64: 1, 128>}]} {
    %c0 = arith.constant 0 : index
    %c0_0 = arith.constant 0 : index
    %0 = vector.load %arg1[%c0, %c0_0] : memref<128x32xf32, #tpu.memory_space<vmem>>, vector<128x32xf32>
    %c0_1 = arith.constant 0 : index
    %c0_2 = arith.constant 0 : index
    %1 = vector.load %arg2[%c0_1, %c0_2] : memref<1x32xf32, #tpu.memory_space<vmem>>, vector<1x32xf32>
    %2 = vector.broadcast %1 : vector<1x32xf32> to vector<128x32xf32>
    %3 = arith.mulf %0, %2 : vector<128x32xf32>
    %cst = arith.constant dense<0.000000e+00> : vector<128xf32>
    %4 = vector.multi_reduction <add>, %3, %cst [1] : vector<128x32xf32> to vector<128xf32>
    %5 = vector.shape_cast %4 : vector<128xf32> to vector<128x1xf32>
    %c0_3 = arith.constant 0 : index
    %6 = memref.load %arg3[%c0_3] : memref<1xf32, #tpu.memory_space<smem>>
    %7 = vector.broadcast %6 : f32 to vector<128x1xf32>
    %8 = arith.addf %5, %7 : vector<128x1xf32>
    %9 = arith.negf %8 : vector<128x1xf32>
    %10 = math.exp %9 : vector<128x1xf32>
    %cst_4 = arith.constant 1.000000e+00 : f32
    %11 = vector.broadcast %cst_4 : f32 to vector<128x1xf32>
    %12 = arith.addf %11, %10 : vector<128x1xf32>
    %13 = arith.divf %11, %12 : vector<128x1xf32>
    %14 = vector.shape_cast %13 : vector<128x1xf32> to vector<1x128xf32>
    %c0_5 = arith.constant 0 : index
    %c0_6 = arith.constant 0 : index
    %15 = vector.load %arg4[%c0_5, %c0_6] : memref<1x128xf32, #tpu.memory_space<vmem>>, vector<1x128xf32>
    tpu.vector_store %arg4[%c0_5, %c0_6], %14 {strides = array<i32>} : memref<1x128xf32, #tpu.memory_space<vmem>>, vector<1x128xf32>,
    return
  }
  func.func @transform_0(%arg0: i32) -> (i32, i32) {
    %c0_i32 = arith.constant 0 : i32
    %c0_i32_0 = arith.constant 0 : i32
    return %arg0, %c0_i32 : i32, i32
  }
  func.func @transform_1(%arg0: i32) -> (i32, i32) {
    %c0_i32 = arith.constant 0 : i32
    %c0_i32_0 = arith.constant 0 : i32
    %c0_i32_1 = arith.constant 0 : i32
    return %c0_i32, %c0_i32_0 : i32, i32
  }
  func.func @transform_2(%arg0: i32) -> i32 {
    %c0_i32 = arith.constant 0 : i32
    %c0_i32_0 = arith.constant 0 : i32
    return %c0_i32 : i32
  }
  func.func @transform_3(%arg0: i32) -> (i32, i32) {
    %c0_i32 = arith.constant 0 : i32
    %c0_i32_0 = arith.constant 0 : i32
    return %c0_i32, %arg0 : i32, i32
  }
}

</mosaic_0001>

<bundles_post_ra>
// kernel: tpu_custom_call.1
= control target key start
LH: loop header
LB: loop body
LE: loop exit
PB: predicated region body
PF: predicated region fallthrough
CT: control target
= control target key end

     0   :  { %vm55_vm0 = vcmask 261120   ;;  %s629_s0 = inlined_call_operand.vmem [shape: f32[128,32], index: 0, kind: input, shape index: {}]   ;;  %s630_s1 = inlined_call_operand.vmem [shape: f32[1,32], index: 1, kind: input, shape index: {}]   ;;  %s631_s2 = inlined_call_operand.<no memory space> [shape: f32[1], index: 2, kind: input, shape index: {}]   ;;  %s632_s3 = inlined_call_operand.hbm [shape: f32[1,128], index: 3, kind: output, shape index: {}]  }
   0x1   :  { %v16_v0 = vld [vmem:[%s629_s0] sm:$0xff]  ;;  %v18_v2 = vld [vmem:[%s629_s0 + $0x10] sm:$0xff]  ;;  %v17_v5 = vld [vmem:[%s629_s0 + $0x8] sm:$0xff] }
   0x2   :  { %v361_v1 = vld [vmem:[%s630_s1] ss:$0 sm:$0xff]  ;;  %v19_v6 = vld [vmem:[%s629_s0 + $0x18] sm:$0xff]  ;;  %v21_v10 = vld [vmem:[%s629_s0 + $0x28] sm:$0xff] }
   0x3   :  { %v39_v3 = vmul.f32 %v361_v1, %v16_v0  ;;  %v41_v4 = vmul.f32 %v361_v1, %v18_v2  ;;  %v40_v7 = vmul.f32 %v361_v1, %v17_v5  ;;  %v42_v8 = vmul.f32 %v361_v1, %v19_v6  ;;  %v20_v9 = vld [vmem:[%s629_s0 + $0x20] sm:$0xff] }
   0x4   :  { %v43_v15 = vmul.f32 %v361_v1, %v20_v9  ;;  %v44_v16 = vmul.f32 %v361_v1, %v21_v10 }
   0x5   :  { %v56_v11 = vsel %vm55_vm0, %v39_v3, 0.0  ;;  %v62_v12 = vsel %vm55_vm0, %v41_v4, 0.0  ;;  %v59_v13 = vsel %vm55_vm0, %v40_v7, 0.0  ;;  %v65_v14 = vsel %vm55_vm0, %v42_v8, 0.0 }
   0x6   :  { %57 = vadd.xlane.f32.xlu0 %v56_v11  ;;  %63 = vadd.xlane.f32.xlu1 %v62_v12 }
   0x7   :  { %9 = vsyncpa [#allocation4], 0  ;;  %v22_v17 = vld [vmem:[%s629_s0 + $0x30] sm:$0xff]  ;;  %v23_v18 = vld [vmem:[%s629_s0 + $0x38] sm:$0xff]  ;;  %v68_v19 = vsel %vm55_vm0, %v43_v15, 0.0  ;;  %v71_v20 = vsel %vm55_vm0, %v44_v16, 0.0  ;;  %v558_v49 = vstv %s631_s2  ;;  %v234_v9 = vlaneseq }
   0x8   :  { %v45_v21 = vmul.f32 %v361_v1, %v22_v17  ;;  %v46_v22 = vmul.f32 %v361_v1, %v23_v18  ;;  %v24_v23 = vld [vmem:[%s629_s0 + $0x40] sm:$0xff]  ;;  %v25_v24 = vld [vmem:[%s629_s0 + $0x48] sm:$0xff]  ;;  %v26_v29 = vld [vmem:[%s629_s0 + $0x50] sm:$0xff]  ;;  %vm245_vm1 = vcmask 130112   ;;  %vm252_vm2 = vcmask 195712  }
   0x9   :  { %v47_v27 = vmul.f32 %v361_v1, %v24_v23  ;;  %v48_v28 = vmul.f32 %v361_v1, %v25_v24  ;;  %v27_v30 = vld [vmem:[%s629_s0 + $0x58] sm:$0xff]  ;;  %v49_v33 = vmul.f32 %v361_v1, %v26_v29  ;;  %v28_v35 = vld [vmem:[%s629_s0 + $0x60] sm:$0xff]  ;;  %v29_v36 = vld [vmem:[%s629_s0 + $0x68] sm:$0xff]  ;;  %vm259_vm3 = vcmask 261312  }
   0xa   :  { %60 = vadd.xlane.f32.xlu0 %v59_v13  ;;  %66 = vadd.xlane.f32.xlu1 %v65_v14  ;;  %v74_v25 = vsel %vm55_vm0, %v45_v21, 0.0  ;;  %v77_v26 = vsel %vm55_vm0, %v46_v22, 0.0  ;;  %v50_v34 = vmul.f32 %v361_v1, %v27_v30  ;;  %v51_v39 = vmul.f32 %v361_v1, %v28_v35  ;;  %v30_v41 = vld [vmem:[%s629_s0 + $0x70] sm:$0xff]  ;;  %v31_v42 = vld [vmem:[%s629_s0 + $0x78] sm:$0xff]  ;;  %s467_s0 = smov [#allocation3]  }
   0xb   :  { %v80_v31 = vsel %vm55_vm0, %v47_v27, 0.0  ;;  %v83_v32 = vsel %vm55_vm0, %v48_v28, 0.0  ;;  %v86_v37 = vsel %vm55_vm0, %v49_v33, 0.0  ;;  %v52_v40 = vmul.f32 %v361_v1, %v29_v36  ;;  %s353_s2 = sshll.u32 %s467_s0, 4  ;;  %s354_s2 = int_to_ptr.vmem [resolvable:$true] %s353_s2 }
   0xc   :  { %v89_v38 = vsel %vm55_vm0, %v50_v34, 0.0  ;;  %v92_v43 = vsel %vm55_vm0, %v51_v39, 0.0  ;;  %v53_v45 = vmul.f32 %v361_v1, %v30_v41  ;;  %v54_v46 = vmul.f32 %v361_v1, %v31_v42  ;;  %s443_s20 = scalar_lea.vmem %s354_s2, 16  ;;  %s447_s21 = scalar_lea.vmem %s354_s2, 32 }
   0xd   :  { %v95_v44 = vsel %vm55_vm0, %v52_v40, 0.0  ;;  %vm266_vm4 = vcmask 326912   ;;  %vm273_vm5 = vcmask 392512   ;;  %vm280_vm6 = vcmask 458112   ;;  %p444_p0 = scmp.ne.s32.totalorder %s354_s2, %s443_s20  ;;  %p448_p1 = scmp.lt.s32.totalorder %s354_s2, %s354_s2 }
   0xe   :  { %69 = vadd.xlane.f32.xlu0 %v68_v19  ;;  %72 = vadd.xlane.f32.xlu1 %v71_v20  ;;  %v98_v47 = vsel %vm55_vm0, %v53_v45, 0.0  ;;  %v101_v48 = vsel %vm55_vm0, %v54_v46, 0.0  ;;  %v570_v20 = vand.u32 127, %v234_v9  ;;  %vm287_vm7 = vcmask 523712   ;;  %p449_p2 = scmp.lt.s32.totalorder %s447_s21, %s443_s20 }
   0xf   :  { %vm294_vm8 = vcmask 589312   ;;  %vm301_vm9 = vcmask 654912   ;;  %vm308_vm10 = vcmask 720512   ;;  %vm315_vm11 = vcmask 786112  }
  0x10   :  { %v240_v35 = vadd.s32 4294967288, %v570_v20  ;;  %vm322_vm12 = vcmask 851712   ;;  %vm329_vm13 = vcmask 917312   ;;  %vm336_vm14 = vcmask 982912   ;;  %p450_p3 = por %p449_p2, %p448_p1 }
  0x11   :  { %vm343_vm15 = vcmask 1048512  }
  0x12   :  { %75 = vadd.xlane.f32.xlu0 %v74_v25  ;;  %78 = vadd.xlane.f32.xlu1 %v77_v26  ;;  %p451_p4 = pnand %p450_p3, %p444_p0 }
  0x16   :  { %81 = vadd.xlane.f32.xlu0 %v80_v31  ;;  %84 = vadd.xlane.f32.xlu1 %v83_v32  ;;  %v574_v31 = vshrl.u32 %v234_v9, 7  ;;  %v247_v32 = vadd.s32 4294967280, %v570_v20 }
  0x18   :  { %v238_v45 = vsub.s32 %v570_v20, %v574_v31 }
  0x1a   :  { %87 = vadd.xlane.f32.xlu0 %v86_v37  ;;  %90 = vadd.xlane.f32.xlu1 %v89_v38 }
  0x1e   :  { %93 = vadd.xlane.f32.xlu0 %v92_v43  ;;  %96 = vadd.xlane.f32.xlu1 %v95_v44  ;;  %v254_v43 = vadd.s32 4294967272, %v570_v20 }
  0x22   :  { %99 = vadd.xlane.f32.xlu0 %v98_v47  ;;  %102 = vadd.xlane.f32.xlu1 %v101_v48 }
  0x93   :  { %v58_v50 = vpop.xlane.xlu0 %57  ;;  %v64_v51 = vpop.xlane.xlu1 %63 }
  0x94   :  { %v106_v52 = vadd.f32 %v558_v49, %v58_v50  ;;  %v108_v53 = vadd.f32 %v558_v49, %v64_v51  ;;  %v250_v50 = vsub.s32 %v247_v32, %v574_v31  ;;  %v261_v51 = vadd.s32 4294967264, %v570_v20 }
  0x96   :  { %v362_v54 = vmul.f32 -1.442695, %v106_v52  ;;  %v364_v55 = vmul.f32 -1.442695, %v108_v53 }
  0x97   :  { %v61_v56 = vpop.xlane.xlu0 %60  ;;  %v67_v57 = vpop.xlane.xlu1 %66 }
  0x98   :  { %379 = vpow2.f32 %v362_v54  ;;  %v107_v58 = vadd.f32 %v558_v49, %v61_v56  ;;  %v109_v59 = vadd.f32 %v558_v49, %v67_v57  ;;  %v243_v56 = vsub.s32 %v240_v35, %v574_v31 }
  0x99   :  { %381 = vpow2.f32 %v364_v55 }
  0x9a   :  { %v363_v60 = vmul.f32 -1.442695, %v107_v58  ;;  %v365_v61 = vmul.f32 -1.442695, %v109_v59 }
  0x9b   :  { %v70_v62 = vpop.xlane.xlu0 %69  ;;  %v73_v63 = vpop.xlane.xlu1 %72 }
  0x9c   :  { %383 = vpow2.f32 %v363_v60  ;;  %v110_v0 = vadd.f32 %v558_v49, %v70_v62  ;;  %v111_v1 = vadd.f32 %v558_v49, %v73_v63  ;;  %v257_v60 = vsub.s32 %v254_v43, %v574_v31 }
  0x9d   :  { %385 = vpow2.f32 %v365_v61  ;;  %v268_v61 = vadd.s32 4294967256, %v570_v20 }
  0x9e   :  { %v366_v2 = vmul.f32 -1.442695, %v110_v0  ;;  %v367_v3 = vmul.f32 -1.442695, %v111_v1 }
  0x9f   :  { %v76_v4 = vpop.xlane.xlu0 %75  ;;  %v79_v5 = vpop.xlane.xlu1 %78 }
  0xa0   :  { %387 = vpow2.f32 %v366_v2  ;;  %v112_v6 = vadd.f32 %v558_v49, %v76_v4  ;;  %v113_v7 = vadd.f32 %v558_v49, %v79_v5  ;;  %v264_v2 = vsub.s32 %v261_v51, %v574_v31 }
  0xa1   :  { %389 = vpow2.f32 %v367_v3  ;;  %v317_v51 = vadd.s32 4294967200, %v570_v20 }
  0xa2   :  { %v380_v8 = vpop.eup %379  ;;  %v368_v10 = vmul.f32 -1.442695, %v112_v6  ;;  %v369_v13 = vmul.f32 -1.442695, %v113_v7  ;;  %v275_v7 = vadd.s32 4294967248, %v570_v20 }
  0xa3   :  { %v382_v11 = vpop.eup %381  ;;  %v170_v12 = vadd.f32 1.0, %v380_v8  ;;  %v82_v14 = vpop.xlane.xlu0 %81 }
  0xa4   :  { %v85_v15 = vpop.xlane.xlu1 %84  ;;  %v172_v16 = vadd.f32 1.0, %v382_v11  ;;  %391 = vpow2.f32 %v368_v10  ;;  %v114_v17 = vadd.f32 %v558_v49, %v82_v14  ;;  %v271_v11 = vsub.s32 %v268_v61, %v574_v31 }
  0xa5   :  { %v115_v18 = vadd.f32 %v558_v49, %v85_v15  ;;  %393 = vrcp.f32 %v170_v12  ;;  %v282_v14 = vadd.s32 4294967240, %v570_v20 }
  0xa6   :  { %v384_v19 = vpop.eup %383  ;;  %395 = vrcp.f32 %v172_v16  ;;  %v370_v21 = vmul.f32 -1.442695, %v114_v17 }
  0xa7   :  { %v386_v22 = vpop.eup %385  ;;  %v171_v23 = vadd.f32 1.0, %v384_v19  ;;  %397 = vpow2.f32 %v369_v13  ;;  %v371_v24 = vmul.f32 -1.442695, %v115_v18  ;;  %v88_v25 = vpop.xlane.xlu0 %87  ;;  %v289_v18 = vadd.s32 4294967232, %v570_v20 }
  0xa8   :  { %v91_v26 = vpop.xlane.xlu1 %90  ;;  %v173_v27 = vadd.f32 1.0, %v386_v22  ;;  %399 = vpow2.f32 %v370_v21  ;;  %v116_v28 = vadd.f32 %v558_v49, %v88_v25 }
  0xa9   :  { %v117_v29 = vadd.f32 %v558_v49, %v91_v26  ;;  %401 = vrcp.f32 %v171_v23  ;;  %v278_v23 = vsub.s32 %v275_v7, %v574_v31  ;;  %v292_v32 = vsub.s32 %v289_v18, %v574_v31 }
  0xaa   :  { %v388_v30 = vpop.eup %387  ;;  %403 = vrcp.f32 %v173_v27  ;;  %v372_v33 = vmul.f32 -1.442695, %v116_v28  ;;  %v285_v27 = vsub.s32 %v282_v14, %v574_v31 }
  0xab   :  { %v390_v34 = vpop.eup %389  ;;  %v174_v36 = vadd.f32 1.0, %v388_v30  ;;  %405 = vpow2.f32 %v371_v24  ;;  %v373_v37 = vmul.f32 -1.442695, %v117_v29  ;;  %v94_v38 = vpop.xlane.xlu0 %93 }
  0xac   :  { %v97_v39 = vpop.xlane.xlu1 %96  ;;  %v175_v40 = vadd.f32 1.0, %v390_v34  ;;  %407 = vpow2.f32 %v372_v33  ;;  %v118_v41 = vadd.f32 %v558_v49, %v94_v38  ;;  %v296_v33 = vadd.s32 4294967224, %v570_v20 }
  0xad   :  { %v119_v42 = vadd.f32 %v558_v49, %v97_v39  ;;  %409 = vrcp.f32 %v174_v36  ;;  %v303_v38 = vadd.s32 4294967216, %v570_v20 }
  0xae   :  { %v392_v44 = vpop.eup %391  ;;  %411 = vrcp.f32 %v175_v40  ;;  %v374_v46 = vmul.f32 -1.442695, %v118_v41  ;;  %v310_v41 = vadd.s32 4294967208, %v570_v20 }
  0xaf   :  { %v375_v47 = vmul.f32 -1.442695, %v119_v42  ;;  %v394_v48 = vpop.eup %393  ;;  %v176_v52 = vadd.f32 1.0, %v392_v44  ;;  %413 = vpow2.f32 %v373_v37  ;;  %v100_v53 = vpop.xlane.xlu0 %99 }
  0xb0   :  { %v103_v54 = vpop.xlane.xlu1 %102  ;;  %v396_v55 = vpop.eup %395  ;;  %415 = vpow2.f32 %v374_v46  ;;  %v120_v57 = vadd.f32 %v558_v49, %v100_v53 }
  0xb1   :  { %v121_v58 = vadd.f32 %v558_v49, %v103_v54  ;;  %v398_v59 = vpop.eup %397  ;;  %417 = vrcp.f32 %v176_v52  ;;  %v239_v49 = vrot.slane %v394_v48, %v238_v45  ;;  %v251_v9 = vrot.slane %v396_v55, %v250_v50 }
  0xb2   :  { %v400_v62 = vpop.eup %399  ;;  %v177_v63 = vadd.f32 1.0, %v398_v59  ;;  %419 = vpow2.f32 %v375_v47  ;;  %v376_v0 = vmul.f32 -1.442695, %v120_v57  ;;  %v299_v45 = vsub.s32 %v296_v33, %v574_v31 }
  0xb3   :  { %v402_v1 = vpop.eup %401  ;;  %v178_v3 = vadd.f32 1.0, %v400_v62  ;;  %v377_v4 = vmul.f32 -1.442695, %v121_v58  ;;  %v306_v50 = vsub.s32 %v303_v38, %v574_v31 }
  0xb4   :  { %v404_v5 = vpop.eup %403  ;;  %v244_v6 = vrot.slane %v402_v1, %v243_v56  ;;  %421 = vrcp.f32 %v177_v63  ;;  %v313_v56 = vsub.s32 %v310_v41, %v574_v31  ;;  %v320_v63 = vsub.s32 %v317_v51, %v574_v31 }
  0xb5   :  { %v406_v8 = vpop.eup %405  ;;  %v258_v10 = vrot.slane %v404_v5, %v257_v60  ;;  %423 = vrcp.f32 %v178_v3  ;;  %v324_v60 = vadd.s32 4294967192, %v570_v20  ;;  %v331_v1 = vadd.s32 4294967184, %v570_v20 }
  0xb6   :  { %v408_v12 = vpop.eup %407  ;;  %v246_v13 = vsel %vm245_vm1, %v244_v6, %v239_v49  ;;  %v179_v15 = vadd.f32 1.0, %v406_v8  ;;  %425 = vpow2.f32 %v376_v0  ;;  %v338_v49 = vadd.s32 4294967176, %v570_v20 }
  0xb7   :  { %v410_v16 = vpop.eup %409  ;;  %v253_v17 = vsel %vm252_vm2, %v251_v9, %v246_v13  ;;  %v180_v19 = vadd.f32 1.0, %v408_v12  ;;  %427 = vpow2.f32 %v377_v4  ;;  %v327_v5 = vsub.s32 %v324_v60, %v574_v31 }
  0xb8   :  { %v412_v21 = vpop.eup %411  ;;  %v265_v22 = vrot.slane %v410_v16, %v264_v2  ;;  %429 = vrcp.f32 %v179_v15  ;;  %v260_v25 = vsel %vm259_vm3, %v258_v10, %v253_v17  ;;  %v334_v9 = vsub.s32 %v331_v1, %v574_v31 }
  0xb9   :  { %v414_v24 = vpop.eup %413  ;;  %431 = vrcp.f32 %v180_v19  ;;  %v272_v30 = vrot.slane %v412_v21, %v271_v11  ;;  %v341_v12 = vsub.s32 %v338_v49, %v574_v31 }
  0xba   :  { %v416_v26 = vpop.eup %415  ;;  %v181_v28 = vadd.f32 1.0, %v414_v24  ;;  %v267_v36 = vsel %vm266_vm4, %v265_v22, %v260_v25 }
  0xbb   :  { %v418_v29 = vpop.eup %417  ;;  %v182_v34 = vadd.f32 1.0, %v416_v26  ;;  %v274_v43 = vsel %vm273_vm5, %v272_v30, %v267_v36 }
  0xbc   :  { %v420_v35 = vpop.eup %419  ;;  %v279_v37 = vrot.slane %v418_v29, %v278_v23  ;;  %433 = vrcp.f32 %v181_v28 }
  0xbd   :  { %435 = vrcp.f32 %v182_v34  ;;  %v183_v39 = vadd.f32 1.0, %v420_v35 }
  0xbe   :  { %v422_v40 = vpop.eup %421  ;;  %v281_v47 = vsel %vm280_vm6, %v279_v37, %v274_v43 }
  0xbf   :  { %v424_v42 = vpop.eup %423  ;;  %v286_v44 = vrot.slane %v422_v40, %v285_v27  ;;  %437 = vrcp.f32 %v183_v39 }
  0xc0   :  { %v426_v46 = vpop.eup %425  ;;  %v293_v48 = vrot.slane %v424_v42, %v292_v32 }
  0xc1   :  { %v428_v52 = vpop.eup %427  ;;  %v184_v53 = vadd.f32 1.0, %v426_v46  ;;  %v288_v59 = vsel %vm287_vm7, %v286_v44, %v281_v47 }
  0xc2   :  { %v430_v54 = vpop.eup %429  ;;  %v185_v55 = vadd.f32 1.0, %v428_v52  ;;  %v295_v62 = vsel %vm294_vm8, %v293_v48, %v288_v59 }
  0xc3   :  { %v432_v57 = vpop.eup %431  ;;  %v300_v58 = vrot.slane %v430_v54, %v299_v45  ;;  %439 = vrcp.f32 %v184_v53 }
  0xc4   :  { %v307_v61 = vrot.slane %v432_v57, %v306_v50  ;;  %441 = vrcp.f32 %v185_v55 }
  0xc5   :  { %v302_v3 = vsel %vm301_vm9, %v300_v58, %v295_v62 }
  0xc6   :  { %v434_v0 = vpop.eup %433  ;;  %v309_v6 = vsel %vm308_vm10, %v307_v61, %v302_v3 }
  0xc7   :  { %v436_v2 = vpop.eup %435  ;;  %v314_v4 = vrot.slane %v434_v0, %v313_v56 }
  0xc8   :  { %v321_v7 = vrot.slane %v436_v2, %v320_v63 }
  0xc9   :  { %v438_v8 = vpop.eup %437  ;;  %v316_v10 = vsel %vm315_vm11, %v314_v4, %v309_v6 }
  0xca   :  { %v328_v11 = vrot.slane %v438_v8, %v327_v5  ;;  %v323_v13 = vsel %vm322_vm12, %v321_v7, %v316_v10 }
  0xcc   :  { %v330_v20 = vsel %vm329_vm13, %v328_v11, %v323_v13 }
  0xcd   :  { %v440_v14 = vpop.eup %439 }
  0xce   :  { %v442_v15 = vpop.eup %441  ;;  %v335_v16 = vrot.slane %v440_v14, %v334_v9 }
  0xcf   :  { %v342_v17 = vrot.slane %v442_v15, %v341_v12 }
  0xd0   :  { %v337_v18 = vsel %vm336_vm14, %v335_v16, %v330_v20 }
  0xd1   :  { %v344_v19 = vsel %vm343_vm15, %v342_v17, %v337_v18 }
  0xd2   :  { %346 = vst [vmem:[#allocation3] sm:$0x1] %v344_v19 }
  0xd3   :  { %454 = shalt.err (!%p451_p4)
}
  0xd4   :  { %s455_s1 = scalar_lea.hbm %s632_s3, 16 }
  0xd5   :  { %p456_p5 = scmp.ne.s32.totalorder %s632_s3, %s455_s1  ;;  %p459_p6 = scmp.lt.u32.totalorder %s455_s1, %s632_s3 }
  0xd7   :  { %p461_p7 = pnand %p459_p6, %p456_p5 }
  0xd9   :  { %464 = shalt.err (!%p461_p7)
}
  0xda   :  { %356 = dma.vmem_to_hbm [thread:$0]  %s354_s2, 16, %s632_s3, [#allocation4]  }
  0xdb   :  { %465 = dma.done.wait [#allocation4], 16  }
  0xdc   :  { %466 = vsyncadd [#allocation4], 4294967280 }
  0xdd   :  { %360 = vsyncpa [#allocation4], 1 }

</bundles_post_ra>
